<compile_context>
chip_gen: v6e
topology: v6e:2x2x1
jax: 0.10.0
libtpu: 0.0.40
codegen_flags: <defaults>
</compile_context>

<pallas_src>
import functools
import math

import jax
import jax.numpy as jnp
from jax.experimental import pallas as pl
from jax.experimental.pallas import tpu as pltpu


def _pe_add_kernel(x_ref, pe_ref, o_ref):
    """x_ref / o_ref: (TB, TS, D) tile of x.  pe_ref: (TS, D) f32 pe tile.

    Pure element-wise add (VPU), fully hidden under the HBM DMA of x/o.
    The add is done in f32 (matching the module's f32 pe buffer) and cast
    back to x.dtype at the store.
    Note: for sub-f32 inputs PyTorch's `x + pe` type-promotes the *output*
    to f32; here the output keeps x.dtype (consistent with _reference below).
    """
    x = x_ref[...].astype(jnp.float32)
    o_ref[...] = (x + pe_ref[...][None, :, :]).astype(o_ref.dtype)


def _sinusoidal_pe(seq_len, d_model):
    """(seq_len, d_model) f32 buffer identical to the PyTorch module's pe[0, :S]."""
    pos = jnp.arange(seq_len, dtype=jnp.float32)[:, None]            # (S, 1)
    col = jnp.arange(d_model, dtype=jnp.int32)[None, :]              # (1, D)
    # even col 2i and odd col 2i+1 share frequency exp(2i * -ln(10000)/D)
    inv_freq = jnp.exp(((col // 2) * 2).astype(jnp.float32) * (-math.log(10000.0) / d_model))
    angle = pos * inv_freq
    return jnp.where(col % 2 == 0, jnp.sin(angle), jnp.cos(angle))


def _choose_tiles(batch, seq_len, d_model, itemsize,
                  target_tile_bytes=6 * 1024 * 1024, seq_tile=None):
    """Pick (TB, TS): ~target-sized x blocks, sublane-aligned, batch folded."""
    # packed sublane tile: (8,128) f32, (16,128) bf16, (32,128) int8
    align = {4: 8, 2: 16, 1: 32}.get(itemsize, 8)
    row_bytes = max(1, d_model * itemsize)
    max_rows = max(align, target_tile_bytes // row_bytes)

    if seq_tile is not None:
        ts = min(seq_tile, seq_len)                 # caller-forced (must be align-multiple or == S)
    elif seq_len <= max_rows:
        ts = seq_len                                # whole sequence in one tile
    else:
        ts = (max_rows // align) * align            # big aligned tile, no artificial cap

    # Fold batch elements into the same block until ~target bytes per step.
    tb = max(1, min(batch, max_rows // max(1, ts)))
    return tb, ts


@functools.partial(jax.jit, static_argnames=("max_len", "seq_tile", "target_tile_bytes"))
def positional_encoding_add(x, max_len=5000, seq_tile=None,
                            target_tile_bytes=6 * 1024 * 1024):
    """Equivalent of PositionalEncoding(d_model=x.shape[-1], max_len).forward(x)."""
    B, S, D = x.shape
    assert S <= max_len, "sequence length exceeds max_len"
    assert D % 2 == 0, "d_model must be even (same assumption as the PyTorch module)"

    itemsize = jnp.dtype(x.dtype).itemsize
    tb, ts = _choose_tiles(B, S, D, itemsize, target_tile_bytes, seq_tile)
    num_s = pl.cdiv(S, ts)
    num_b = pl.cdiv(B, tb)

    pe = _sinusoidal_pe(S, D)                       # (S, D) f32, tiny vs x

    x_block = (tb, ts, D)
    pe_block = (ts, D)

    # VMEM: double-buffered x in + out tiles, double-buffered f32 pe tile, slack.
    vmem_needed = 4 * tb * ts * D * itemsize + 2 * ts * D * 4 + (2 << 20)
    vmem_limit = int(min(max(vmem_needed, 16 << 20), 48 << 20))   # 48 MiB fits v7x's 64 MiB VMEM

    cost = pl.CostEstimate(
        flops=B * S * D,                                     # the add
        transcendentals=0,                                   # pe built outside the kernel
        bytes_accessed=2 * B * S * D * itemsize + S * D * 4, # read x + write y + read pe
    )

    return pl.pallas_call(
        _pe_add_kernel,
        out_shape=jax.ShapeDtypeStruct((B, S, D), x.dtype),
        grid_spec=pltpu.PrefetchScalarGridSpec(
            num_scalar_prefetch=0,
            # batch innermost: pe block index is constant across it, so the pe
            # tile is fetched once per sequence tile and reused across batch.
            grid=(num_s, num_b),
            in_specs=[
                pl.BlockSpec(x_block, lambda s, b: (b, s, 0)),
                pl.BlockSpec(pe_block, lambda s, b: (s, 0)),
            ],
            out_specs=pl.BlockSpec(x_block, lambda s, b: (b, s, 0)),
        ),
        compiler_params=pltpu.CompilerParams(
            dimension_semantics=("parallel", "parallel"),   # shards across v7x's 2 TCs
            vmem_limit_bytes=vmem_limit,
        ),
        cost_estimate=cost,
    )(x, pe)


def _reference(x):
    """Pure-JAX reference mirroring the PyTorch buffer construction."""
    B, S, D = x.shape
    position = jnp.arange(S, dtype=jnp.float32)[:, None]
    div_term = jnp.exp(jnp.arange(0, D, 2, dtype=jnp.float32) * (-math.log(10000.0) / D))
    pe = jnp.zeros((S, D), jnp.float32)
    pe = pe.at[:, 0::2].set(jnp.sin(position * div_term))
    pe = pe.at[:, 1::2].set(jnp.cos(position * div_term))
    return (x.astype(jnp.float32) + pe[None, :, :]).astype(x.dtype)


if __name__ == "__main__":
    key = jax.random.PRNGKey(0)

    # Small demo shape; d_model a multiple of 128 keeps the output lane-dense.
    B, S, D = 2, 16, 128
    x = jax.random.normal(key, (B, S, D), dtype=jnp.float32)
    out = jax.block_until_ready(positional_encoding_add(x))
    assert out.shape == x.shape and out.dtype == x.dtype
    assert jnp.allclose(out, _reference(x), atol=1e-5, rtol=1e-5), "mismatch vs reference"

    # Exercise the sequence-tiled path (ragged final s-tile) plus batch folding.
    x2 = jax.random.normal(jax.random.PRNGKey(0), (3, 40, 128), dtype=jnp.float32)
    out2 = jax.block_until_ready(positional_encoding_add(x2, seq_tile=16))
    assert jnp.allclose(out2, _reference(x2), atol=1e-5, rtol=1e-5), "mismatch vs reference (tiled)"

    print("KERNEL_OK")
</pallas_src>

<mosaic_0001>
module attributes {stable_mosaic.version = 11 : i64} {
  func.func @_pe_add_kernel(%arg0: i32, %arg1: i32, %arg2: memref<2x16x128xf32, #tpu.memory_space<vmem>>, %arg3: memref<16x128xf32, #tpu.memory_space<vmem>>, %arg4: memref<2x16x128xf32, #tpu.memory_space<vmem>>) attributes {dimension_semantics = [#tpu.dimension_semantics<parallel>, #tpu.dimension_semantics<parallel>], iteration_bounds = array<i64: 1, 1>, scalar_prefetch = 0 : i64, scratch_operands = 0 : i64, tpu.core_type = #tpu.core_type<tc>, window_params = [{transform_indices = @transform_0, window_bounds = array<i64: 2, 16, 128>}, {transform_indices = @transform_1, window_bounds = array<i64: 16, 128>}, {transform_indices = @transform_2, window_bounds = array<i64: 2, 16, 128>}]} {
    %c0 = arith.constant 0 : index
    %c0_0 = arith.constant 0 : index
    %c0_1 = arith.constant 0 : index
    %0 = vector.load %arg2[%c0, %c0_0, %c0_1] : memref<2x16x128xf32, #tpu.memory_space<vmem>>, vector<2x16x128xf32>
    %c0_2 = arith.constant 0 : index
    %c0_3 = arith.constant 0 : index
    %1 = vector.load %arg3[%c0_2, %c0_3] : memref<16x128xf32, #tpu.memory_space<vmem>>, vector<16x128xf32>
    %2 = vector.shape_cast %1 : vector<16x128xf32> to vector<1x16x128xf32>
    %3 = vector.broadcast %2 : vector<1x16x128xf32> to vector<2x16x128xf32>
    %4 = arith.addf %0, %3 : vector<2x16x128xf32>
    %c0_4 = arith.constant 0 : index
    %c0_5 = arith.constant 0 : index
    %c0_6 = arith.constant 0 : index
    %5 = vector.load %arg4[%c0_4, %c0_5, %c0_6] : memref<2x16x128xf32, #tpu.memory_space<vmem>>, vector<2x16x128xf32>
    tpu.vector_store %arg4[%c0_4, %c0_5, %c0_6], %4 {strides = array<i32>} : memref<2x16x128xf32, #tpu.memory_space<vmem>>, vector<2x16x128xf32>,
    return
  }
  func.func @transform_0(%arg0: i32, %arg1: i32) -> (i32, i32, i32) {
    %c0_i32 = arith.constant 0 : i32
    %c0_i32_0 = arith.constant 0 : i32
    return %arg1, %arg0, %c0_i32 : i32, i32, i32
  }
  func.func @transform_1(%arg0: i32, %arg1: i32) -> (i32, i32) {
    %c0_i32 = arith.constant 0 : i32
    %c0_i32_0 = arith.constant 0 : i32
    return %arg0, %c0_i32 : i32, i32
  }
  func.func @transform_2(%arg0: i32, %arg1: i32) -> (i32, i32, i32) {
    %c0_i32 = arith.constant 0 : i32
    %c0_i32_0 = arith.constant 0 : i32
    return %arg1, %arg0, %c0_i32 : i32, i32, i32
  }
}

</mosaic_0001>

<bundles_post_ra>
// kernel: positional_encoding_add.1
= control target key start
LH: loop header
LB: loop body
LE: loop exit
PB: predicated region body
PF: predicated region fallthrough
CT: control target
= control target key end

     0   :  { %7 = vsyncpa [#allocation3], 0  ;;  %s142_s0 = inlined_call_operand.hbm [shape: f32[2,16,128], index: 0, kind: input, shape index: {}]   ;;  %s143_s1 = inlined_call_operand.vmem [shape: f32[16,128], index: 1, kind: input, shape index: {}]   ;;  %s144_s2 = inlined_call_operand.hbm [shape: f32[2,16,128], index: 2, kind: output, shape index: {}]  }
   0x1   :  { %8 = vsyncpa [#allocation4], 0  ;;  %s105_s9 = smov [#allocation2]  }
   0x2   :  { %s14_s10 = sshll.u32 %s105_s9, 4  ;;  %s15_s10 = int_to_ptr.vmem [resolvable:$true] %s14_s10 }
   0x3   :  { %s69_s11 = scalar_lea.vmem %s15_s10, 512  ;;  %p74_p1 = scmp.lt.s32.totalorder %s15_s10, %s15_s10 }
   0x4   :  { %p70_p0 = scmp.ne.s32.totalorder %s15_s10, %s69_s11  ;;  %p75_p2 = scmp.lt.s32.totalorder %s69_s11, %s69_s11 }
   0x6   :  { %p76_p3 = por %p75_p2, %p74_p1 }
   0x8   :  { %p77_p4 = pnand %p76_p3, %p70_p0 }
   0xa   :  { %80 = shalt.err (!%p77_p4)
}
   0xb   :  { %s106_s12 = smov 128   ;;  %s107_s13 = smov 8  }
   0xc   :  { %20 = dma.hbm_to_vmem [thread:$0]  %s142_s0, 512, %s15_s10, [#allocation3], %s106_s12, %s106_s12, %s107_s13  }
   0xd   :  { %101 = dma.done.wait [#allocation3], 512  }
   0xe   :  { %102 = vsyncadd [#allocation3], 4294966784  ;;  %s108_s16 = smov [#allocation5]   ;;  %v26_v0 = vld [vmem:[#allocation2] sm:$0xff]  ;;  %v27_v2 = vld [vmem:[#allocation2 + $0x8] sm:$0xff] }
   0xf   :  { %s45_s17 = sshll.u32 %s108_s16, 4  ;;  %v30_v1 = vld [vmem:[%s143_s1] sm:$0xff]  ;;  %v31_v4 = vld [vmem:[%s143_s1 + $0x8] sm:$0xff]  ;;  %v28_v5 = vld [vmem:[#allocation2 + $0x10] sm:$0xff]  ;;  %s46_s17 = int_to_ptr.vmem [resolvable:$true] %s45_s17 }
  0x10   :  { %v32_v3 = vadd.f32 %v30_v1, %v26_v0  ;;  %v29_v6 = vld [vmem:[#allocation2 + $0x18] sm:$0xff]  ;;  %v33_v7 = vadd.f32 %v31_v4, %v27_v2  ;;  %v34_v8 = vadd.f32 %v30_v1, %v28_v5  ;;  %s81_s0 = scalar_lea.vmem %s46_s17, 512  ;;  %p86_p6 = scmp.lt.s32.totalorder %s46_s17, %s46_s17 }
  0x11   :  { %v35_v9 = vadd.f32 %v31_v4, %v29_v6  ;;  %p82_p5 = scmp.ne.s32.totalorder %s46_s17, %s81_s0  ;;  %p87_p7 = scmp.lt.s32.totalorder %s81_s0, %s81_s0 }
  0x12   :  { %36 = vst [vmem:[#allocation5] sm:$0xff] %v32_v3  ;;  %37 = vst [vmem:[#allocation5 + $0x8] sm:$0xff] %v33_v7 }
  0x13   :  { %38 = vst [vmem:[#allocation5 + $0x10] sm:$0xff] %v34_v8  ;;  %39 = vst [vmem:[#allocation5 + $0x18] sm:$0xff] %v35_v9  ;;  %p88_p8 = por %p87_p7, %p86_p6 }
  0x15   :  { %p89_p9 = pnand %p88_p8, %p82_p5 }
  0x17   :  { %92 = shalt.err (!%p89_p9)
}
  0x18   :  { %51 = dma.vmem_to_hbm [thread:$0]  %s46_s17, 512, %s144_s2, [#allocation4], %s106_s12, %s106_s12, %s107_s13  }
  0x19   :  { %103 = dma.done.wait [#allocation4], 512  }
  0x1a   :  { %104 = vsyncadd [#allocation4], 4294966784 }
  0x1b   :  { %55 = vsyncpa [#allocation3], 1 }
  0x1c   :  { %56 = vsyncpa [#allocation4], 1 }

</bundles_post_ra>
